<compile_context>
chip_gen: v7x
topology: tpu7x:2x2x1
jax: 0.10.0
libtpu: 0.0.40
codegen_flags: <defaults>
</compile_context>

<pallas_src>
import functools

import jax
import jax.numpy as jnp
from jax.experimental import pallas as pl
from jax.experimental.pallas import tpu as pltpu

LATENT_VECTOR_LENGTH = 20
HIDDEN = 100

_LANE = 128     # vreg lane width
_SUBLANE = 8    # vreg sublane count (f32)


def _round_up(n, m):
    return ((n + m - 1) // m) * m


def _server_vertical_kernel(x_ref, w1_ref, b1_ref, w2_ref, b2_ref, out_ref,
                            *, num_classes):
    """One batch tile: Linear -> ReLU -> Linear -> masked log_softmax."""
    x = x_ref[...]                                                        # [TB, Dp]

    # Layer 1: Linear + ReLU (padded hidden lanes stay exactly 0).
    h = jnp.dot(x, w1_ref[...], preferred_element_type=jnp.float32)      # [TB, Hp]
    h = jnp.maximum(h + b1_ref[...], 0.0)

    # Layer 2: Linear (padded w2 rows are 0 -> exact logits in real lanes).
    logits = jnp.dot(h, w2_ref[...], preferred_element_type=jnp.float32) # [TB, Cp]
    logits = logits + b2_ref[...]

    # log_softmax over the real classes only; padded lanes are pushed to -inf
    # so they contribute exp(-inf)=0 to the sum and never win the max.
    lane = jax.lax.broadcasted_iota(jnp.int32, logits.shape, 1)
    masked = jnp.where(lane < num_classes, logits, -jnp.inf)
    m = jnp.max(masked, axis=-1, keepdims=True)                          # [TB, 1]
    shifted = masked - m
    lse = jnp.log(jnp.sum(jnp.exp(shifted), axis=-1, keepdims=True))     # [TB, 1]
    out_ref[...] = (shifted - lse).astype(out_ref.dtype)


def server_vertical_forward(x, w1, b1, w2, b2, *, block_b=512):
    """x: [B, num_clients*20], w1: [D_in, 100], b1: [1, 100],
    w2: [100, C], b2: [1, C]  ->  [B, C] log-probabilities.

    block_b: batch tile.  512 keeps the MXU streaming on v5e/v6e while the
    double-buffered f32 tiles (x: TB*128*4 B, out: TB*128*4 B, each x2) plus the
    resident weights stay far inside v7x's 64 MiB VMEM.
    """
    B, d_in = x.shape
    hid, C = w2.shape
    assert w1.shape == (d_in, hid) and b1.shape == (1, hid) and b2.shape == (1, C)

    # Pad feature/class dims up to full lanes, batch up to a multiple of the tile.
    d_in_p = _round_up(max(d_in, _LANE), _LANE)
    hid_p = _round_up(max(hid, _LANE), _LANE)
    c_p = _round_up(max(C, _LANE), _LANE)
    tb = min(block_b, _round_up(B, _SUBLANE))
    b_p = _round_up(B, tb)

    # Zero padding is exact: padded input lanes multiply zero w1 rows, padded
    # hidden units are ReLU(0)=0 and hit zero w2 rows; padded class lanes are
    # masked inside the kernel and sliced off below.
    xp = jnp.pad(x.astype(jnp.float32), ((0, b_p - B), (0, d_in_p - d_in)))
    w1p = jnp.pad(w1.astype(jnp.float32), ((0, d_in_p - d_in), (0, hid_p - hid)))
    b1p = jnp.pad(b1.astype(jnp.float32), ((0, 0), (0, hid_p - hid)))
    w2p = jnp.pad(w2.astype(jnp.float32), ((0, hid_p - hid), (0, c_p - C)))
    b2p = jnp.pad(b2.astype(jnp.float32), ((0, 0), (0, c_p - C)))
    # TODO(synk): for very large B this is HBM-bound on x; storing/loading x as
    # bf16 (f32 accumulation on the MXU) would halve that traffic.

    kernel = functools.partial(_server_vertical_kernel, num_classes=C)
    out = pl.pallas_call(
        kernel,
        out_shape=jax.ShapeDtypeStruct((b_p, c_p), jnp.float32),
        grid=(b_p // tb,),
        in_specs=[
            pl.BlockSpec((tb, d_in_p), lambda i: (i, 0)),     # x: tiled over batch
            pl.BlockSpec((d_in_p, hid_p), lambda i: (0, 0)),  # w1: VMEM-resident
            pl.BlockSpec((1, hid_p), lambda i: (0, 0)),       # b1: VMEM-resident
            pl.BlockSpec((hid_p, c_p), lambda i: (0, 0)),     # w2: VMEM-resident
            pl.BlockSpec((1, c_p), lambda i: (0, 0)),         # b2: VMEM-resident
        ],
        out_specs=pl.BlockSpec((tb, c_p), lambda i: (i, 0)),  # lane-dense output
        compiler_params=pltpu.CompilerParams(
            dimension_semantics=("parallel",)),               # v7x: both TCs
    )(xp, w1p, b1p, w2p, b2p)

    return out[:B, :C]


def init_params(key, num_clients, num_classes):
    """Deterministic init matching nn.Linear shapes (stored as [in, out])."""
    d_in = num_clients * LATENT_VECTOR_LENGTH
    k1, k2, k3, k4 = jax.random.split(key, 4)
    # PyTorch default: U(-1/sqrt(fan_in), 1/sqrt(fan_in))
    bound1 = 1.0 / jnp.sqrt(d_in)
    bound2 = 1.0 / jnp.sqrt(HIDDEN)
    w1 = jax.random.uniform(k1, (d_in, HIDDEN), jnp.float32, -bound1, bound1)
    b1 = jax.random.uniform(k2, (1, HIDDEN), jnp.float32, -bound1, bound1)
    w2 = jax.random.uniform(k3, (HIDDEN, num_classes), jnp.float32, -bound2, bound2)
    b2 = jax.random.uniform(k4, (1, num_classes), jnp.float32, -bound2, bound2)
    return w1, b1, w2, b2


def reference_forward(x, w1, b1, w2, b2):
    h = jnp.maximum(x @ w1 + b1, 0.0)
    logits = h @ w2 + b2
    return jax.nn.log_softmax(logits, axis=1)


if __name__ == "__main__":
    num_clients = 4
    num_classes = 10
    batch = 8

    key = jax.random.PRNGKey(0)
    kx, kp = jax.random.split(key)
    x = jax.random.normal(kx, (batch, num_clients * LATENT_VECTOR_LENGTH),
                          jnp.float32)
    w1, b1, w2, b2 = init_params(kp, num_clients, num_classes)

    out = server_vertical_forward(x, w1, b1, w2, b2)
    out = jax.block_until_ready(out)

    ref = reference_forward(x, w1, b1, w2, b2)
    assert out.shape == (batch, num_classes)
    assert bool(jnp.all(jnp.isfinite(out))), "non-finite output"
    assert jnp.allclose(out, ref, atol=1e-5, rtol=1e-5), "mismatch vs reference"

    print("KERNEL_OK")
</pallas_src>

<mosaic_0001>
module attributes {stable_mosaic.version = 11 : i64} {
  func.func @_server_vertical_kernel(%arg0: i32, %arg1: memref<8x128xf32, #tpu.memory_space<vmem>>, %arg2: memref<128x128xf32, #tpu.memory_space<vmem>>, %arg3: memref<1x128xf32, #tpu.memory_space<vmem>>, %arg4: memref<128x128xf32, #tpu.memory_space<vmem>>, %arg5: memref<1x128xf32, #tpu.memory_space<vmem>>, %arg6: memref<8x128xf32, #tpu.memory_space<vmem>>) attributes {dimension_semantics = [#tpu.dimension_semantics<parallel>], iteration_bounds = array<i64: 1>, scalar_prefetch = 0 : i64, scratch_operands = 0 : i64, tpu.core_type = #tpu.core_type<tc>, window_params = [{transform_indices = @transform_0, window_bounds = array<i64: 8, 128>}, {pipeline_mode = #tpu.pipeline_mode<synchronous>, transform_indices = @transform_1, window_bounds = array<i64: 128, 128>}, {pipeline_mode = #tpu.pipeline_mode<synchronous>, transform_indices = @transform_2, window_bounds = array<i64: 1, 128>}, {pipeline_mode = #tpu.pipeline_mode<synchronous>, transform_indices = @transform_3, window_bounds = array<i64: 128, 128>}, {pipeline_mode = #tpu.pipeline_mode<synchronous>, transform_indices = @transform_4, window_bounds = array<i64: 1, 128>}, {transform_indices = @transform_5, window_bounds = array<i64: 8, 128>}]} {
    %c0 = arith.constant 0 : index
    %c0_0 = arith.constant 0 : index
    %0 = vector.load %arg1[%c0, %c0_0] : memref<8x128xf32, #tpu.memory_space<vmem>>, vector<8x128xf32>
    %c0_1 = arith.constant 0 : index
    %c0_2 = arith.constant 0 : index
    %1 = vector.load %arg2[%c0_1, %c0_2] : memref<128x128xf32, #tpu.memory_space<vmem>>, vector<128x128xf32>
    %cst = arith.constant dense<0.000000e+00> : vector<8x128xf32>
    %2 = tpu.matmul %0, %1, %cst {dimension_numbers = #tpu.dot_dimension_numbers<[1], [0], [0], [1], [0, 0, 1, 1], [], []>} : vector<8x128xf32>, vector<128x128xf32>, vector<8x128xf32> -> vector<8x128xf32>
    %c0_3 = arith.constant 0 : index
    %c0_4 = arith.constant 0 : index
    %3 = vector.load %arg3[%c0_3, %c0_4] : memref<1x128xf32, #tpu.memory_space<vmem>>, vector<1x128xf32>
    %4 = vector.broadcast %3 : vector<1x128xf32> to vector<8x128xf32>
    %5 = arith.addf %2, %4 : vector<8x128xf32>
    %cst_5 = arith.constant 0.000000e+00 : f32
    %6 = vector.broadcast %cst_5 : f32 to vector<8x128xf32>
    %7 = arith.maximumf %5, %6 : vector<8x128xf32>
    %c0_6 = arith.constant 0 : index
    %c0_7 = arith.constant 0 : index
    %8 = vector.load %arg4[%c0_6, %c0_7] : memref<128x128xf32, #tpu.memory_space<vmem>>, vector<128x128xf32>
    %cst_8 = arith.constant dense<0.000000e+00> : vector<8x128xf32>
    %9 = tpu.matmul %7, %8, %cst_8 {dimension_numbers = #tpu.dot_dimension_numbers<[1], [0], [0], [1], [0, 0, 1, 1], [], []>} : vector<8x128xf32>, vector<128x128xf32>, vector<8x128xf32> -> vector<8x128xf32>
    %c0_9 = arith.constant 0 : index
    %c0_10 = arith.constant 0 : index
    %10 = vector.load %arg5[%c0_9, %c0_10] : memref<1x128xf32, #tpu.memory_space<vmem>>, vector<1x128xf32>
    %11 = vector.broadcast %10 : vector<1x128xf32> to vector<8x128xf32>
    %12 = arith.addf %9, %11 : vector<8x128xf32>
    %13 = tpu.iota {dimensions = array<i32: 1>} : vector<8x128xi32>
    %c10_i32 = arith.constant 10 : i32
    %14 = vector.broadcast %c10_i32 : i32 to vector<8x128xi32>
    %15 = arith.cmpi slt, %13, %14 : vector<8x128xi32>
    %cst_11 = arith.constant 0xFF800000 : f32
    %16 = vector.broadcast %cst_11 : f32 to vector<8x128xf32>
    %17 = arith.select %15, %12, %16 : vector<8x128xi1>, vector<8x128xf32>
    %cst_12 = arith.constant dense<0xFF800000> : vector<8xf32>
    %18 = vector.multi_reduction <maximumf>, %17, %cst_12 [1] : vector<8x128xf32> to vector<8xf32>
    %19 = vector.shape_cast %18 : vector<8xf32> to vector<8x1xf32>
    %20 = vector.broadcast %19 : vector<8x1xf32> to vector<8x128xf32>
    %21 = arith.subf %17, %20 : vector<8x128xf32>
    %22 = math.exp %21 : vector<8x128xf32>
    %cst_13 = arith.constant dense<0.000000e+00> : vector<8xf32>
    %23 = vector.multi_reduction <add>, %22, %cst_13 [1] : vector<8x128xf32> to vector<8xf32>
    %24 = vector.shape_cast %23 : vector<8xf32> to vector<8x1xf32>
    %25 = math.log %24 : vector<8x1xf32>
    %26 = vector.broadcast %25 : vector<8x1xf32> to vector<8x128xf32>
    %27 = arith.subf %21, %26 : vector<8x128xf32>
    %c0_14 = arith.constant 0 : index
    %c0_15 = arith.constant 0 : index
    %28 = vector.load %arg6[%c0_14, %c0_15] : memref<8x128xf32, #tpu.memory_space<vmem>>, vector<8x128xf32>
    tpu.vector_store %arg6[%c0_14, %c0_15], %27 {strides = array<i32>} : memref<8x128xf32, #tpu.memory_space<vmem>>, vector<8x128xf32>,
    return
  }
  func.func @transform_0(%arg0: i32) -> (i32, i32) {
    %c0_i32 = arith.constant 0 : i32
    %c0_i32_0 = arith.constant 0 : i32
    return %arg0, %c0_i32 : i32, i32
  }
  func.func @transform_1(%arg0: i32) -> (i32, i32) {
    %c0_i32 = arith.constant 0 : i32
    %c0_i32_0 = arith.constant 0 : i32
    %c0_i32_1 = arith.constant 0 : i32
    return %c0_i32, %c0_i32_0 : i32, i32
  }
  func.func @transform_2(%arg0: i32) -> (i32, i32) {
    %c0_i32 = arith.constant 0 : i32
    %c0_i32_0 = arith.constant 0 : i32
    %c0_i32_1 = arith.constant 0 : i32
    return %c0_i32, %c0_i32_0 : i32, i32
  }
  func.func @transform_3(%arg0: i32) -> (i32, i32) {
    %c0_i32 = arith.constant 0 : i32
    %c0_i32_0 = arith.constant 0 : i32
    %c0_i32_1 = arith.constant 0 : i32
    return %c0_i32, %c0_i32_0 : i32, i32
  }
  func.func @transform_4(%arg0: i32) -> (i32, i32) {
    %c0_i32 = arith.constant 0 : i32
    %c0_i32_0 = arith.constant 0 : i32
    %c0_i32_1 = arith.constant 0 : i32
    return %c0_i32, %c0_i32_0 : i32, i32
  }
  func.func @transform_5(%arg0: i32) -> (i32, i32) {
    %c0_i32 = arith.constant 0 : i32
    %c0_i32_0 = arith.constant 0 : i32
    return %arg0, %c0_i32 : i32, i32
  }
}

</mosaic_0001>

<bundles_post_ra>
// kernel: tpu_custom_call.1
= control target key start
LH: loop header
LB: loop body
LE: loop exit
PB: predicated region body
PF: predicated region fallthrough
CT: control target
= control target key end

     0   :  { %10 = vsyncpa [#allocation3], 0  ;;  %s655_s0 = inlined_call_operand.hbm [shape: f32[8,128], index: 0, kind: input, shape index: {}]   ;;  %s656_s1 = inlined_call_operand.hbm [shape: f32[128,128], index: 1, kind: input, shape index: {}]   ;;  %s657_s2 = inlined_call_operand.vmem [shape: f32[1,128], index: 2, kind: input, shape index: {}]   ;;  %s658_s3 = inlined_call_operand.hbm [shape: f32[128,128], index: 3, kind: input, shape index: {}]   ;;  %s659_s4 = inlined_call_operand.vmem [shape: f32[1,128], index: 4, kind: input, shape index: {}]   ;;  %s660_s5 = inlined_call_operand.hbm [shape: f32[8,128], index: 5, kind: output, shape index: {}]  }
   0x1   :  { %11 = vsyncpa [#allocation6], 0 }
   0x2   :  { %12 = vsyncpa [#allocation4], 0  ;;  %s540_s18 = smov [#allocation5]   ;;  %s446_s22 = scalar_lea.hbm %s656_s1, 2048 }
   0x3   :  { %s28_s19 = sshll.u32 %s540_s18, 4  ;;  %p447_p0 = scmp.ne.s32.totalorder %s656_s1, %s446_s22  ;;  %s29_s19 = int_to_ptr.vmem [resolvable:$true] %s28_s19 }
   0x4   :  { %p450_p1 = scmp.lt.u32.totalorder %s446_s22, %s656_s1 }
   0x6   :  { %p452_p2 = pnand %p450_p1, %p447_p0 }
   0x8   :  { %455 = shalt.err (!%p452_p2)
}
   0x9   :  { %s456_s27 = scalar_lea.vmem %s29_s19, 2048  ;;  %p461_p4 = scmp.lt.s32.totalorder %s29_s19, %s29_s19 }
   0xa   :  { %p457_p3 = scmp.ne.s32.totalorder %s29_s19, %s456_s27  ;;  %p462_p5 = scmp.lt.s32.totalorder %s456_s27, %s456_s27 }
   0xc   :  { %p463_p6 = por %p462_p5, %p461_p4 }
   0xe   :  { %p464_p7 = pnand %p463_p6, %p457_p3 }
  0x10   :  { %467 = shalt.err (!%p464_p7)
}
  0x11   :  { %s541_s28 = smov 128   ;;  %s542_s29 = smov 8  }
  0x12   :  { %34 = dma.hbm_to_vmem [thread:$0]  %s656_s1, 2048, %s29_s19, [#allocation6], %s541_s28, %s541_s28, %s542_s29  }
  0x13   :  { %s543_s7 = smov [#allocation2]   ;;  %s544_s9 = smov [#allocation7]  }
  0x14   :  { %s19_s8 = sshll.u32 %s543_s7, 4  ;;  %s42_s10 = sshll.u32 %s544_s9, 4  ;;  %s20_s8 = int_to_ptr.vmem [resolvable:$true] %s19_s8  ;;  %s43_s10 = int_to_ptr.vmem [resolvable:$true] %s42_s10 }
  0x15   :  { %s468_s13 = scalar_lea.hbm %s655_s0, 128 }
  0x16   :  { %p469_p8 = scmp.ne.s32.totalorder %s655_s0, %s468_s13  ;;  %p472_p9 = scmp.lt.u32.totalorder %s468_s13, %s655_s0 }
  0x18   :  { %p474_p10 = pnand %p472_p9, %p469_p8 }
  0x1a   :  { %477 = shalt.err (!%p474_p10)
}
  0x1b   :  { %s478_s1 = scalar_lea.vmem %s20_s8, 128  ;;  %p483_p12 = scmp.lt.s32.totalorder %s20_s8, %s20_s8 }
  0x1c   :  { %p479_p11 = scmp.ne.s32.totalorder %s20_s8, %s478_s1  ;;  %p484_p13 = scmp.lt.s32.totalorder %s478_s1, %s478_s1 }
  0x1e   :  { %p485_p0 = por %p484_p13, %p483_p12 }
  0x20   :  { %p486_p1 = pnand %p485_p0, %p479_p11 }
  0x22   :  { %489 = shalt.err (!%p486_p1)
}
  0x23   :  { %22 = dma.hbm_to_vmem [thread:$0]  %s655_s0, 128, %s20_s8, [#allocation3]  }
  0x24   :  { %s490_s22 = scalar_lea.hbm %s658_s3, 2048 }
  0x25   :  { %p491_p2 = scmp.ne.s32.totalorder %s658_s3, %s490_s22  ;;  %p494_p3 = scmp.lt.u32.totalorder %s490_s22, %s658_s3 }
  0x27   :  { %p496_p4 = pnand %p494_p3, %p491_p2 }
  0x29   :  { %499 = shalt.err (!%p496_p4)
}
  0x2a   :  { %s500_s27 = scalar_lea.vmem %s43_s10, 2048  ;;  %p505_p6 = scmp.lt.s32.totalorder %s43_s10, %s43_s10 }
  0x2b   :  { %p501_p5 = scmp.ne.s32.totalorder %s43_s10, %s500_s27  ;;  %p506_p7 = scmp.lt.s32.totalorder %s500_s27, %s500_s27 }
  0x2d   :  { %p507_p8 = por %p506_p7, %p505_p6 }
  0x2f   :  { %p508_p9 = pnand %p507_p8, %p501_p5 }
  0x31   :  { %511 = shalt.err (!%p508_p9)
}
  0x32   :  { %48 = dma.hbm_to_vmem [thread:$0]  %s658_s3, 2048, %s43_s10, [#allocation6], %s541_s28, %s541_s28, %s542_s29  }
  0x33   :  { %534 = dma.done.wait [#allocation3], 128  }
  0x34   :  { %535 = vsyncadd [#allocation3], 4294967168 }
  0x35   :  { %536 = dma.done.wait [#allocation6], 4096  }
  0x36   :  { %537 = vsyncadd [#allocation6], 4294963200  ;;  %v545_v0 = vmov 0.0|0.0   ;;  %vm546_vm0 = vmmov 0   ;;  %v547_v1 = vmov 0.0   ;;  %v61_v2 = vld [vmem:[#allocation5] sm:$0xff]  ;;  %v248_v56 = vlaneseq }
  0x37   :  { %385 = vmatprep.subr.bf16.mxu0 %v545_v0  ;;  %347 = vmatprep.mubr.msk.f32.mxu0 %vm546_vm0, %v547_v1  ;;  %v62_v3 = vld [vmem:[#allocation5 + $0x8] sm:$0xff]  ;;  %v63_v4 = vld [vmem:[#allocation5 + $0x10] sm:$0xff]  ;;  %v64_v6 = vld [vmem:[#allocation5 + $0x18] sm:$0xff] }
  0x38   :  { %409 = vmatprep.subr.bf16.mxu1 %v545_v0  ;;  %382 = vmatprep.mubr.msk.f32.mxu1 %vm546_vm0, %v547_v1  ;;  %v386_v5 = vpack.c.bf16 %v62_v3, %v61_v2  ;;  %v389_v7 = vpack.c.bf16 %v64_v6, %v63_v4  ;;  %v65_v8 = vld [vmem:[#allocation5 + $0x20] sm:$0xff]  ;;  %v66_v9 = vld [vmem:[#allocation5 + $0x28] sm:$0xff]  ;;  %v157_v12 = vld [vmem:[#allocation7 + $0x10] sm:$0xff]  ;;  %v249_v57 = vand.u32 127, %v248_v56 }
  0x39   :  { %v155_v10 = vld [vmem:[#allocation7] sm:$0xff]  ;;  %v156_v11 = vld [vmem:[#allocation7 + $0x8] sm:$0xff]  ;;  %v158_v13 = vld [vmem:[#allocation7 + $0x18] sm:$0xff]  ;;  %v392_v14 = vpack.c.bf16 %v66_v9, %v65_v8 }
  0x3a   :  { %387 = vmatpush3.bf16.msra.mxu0 %v386_v5  ;;  %v410_v15 = vpack.c.bf16 %v156_v11, %v155_v10  ;;  %v67_v16 = vld [vmem:[#allocation5 + $0x30] sm:$0xff]  ;;  %v68_v17 = vld [vmem:[#allocation5 + $0x38] sm:$0xff]  ;;  %v413_v18 = vpack.c.bf16 %v158_v13, %v157_v12  ;;  %v159_v19 = vld [vmem:[#allocation7 + $0x20] sm:$0xff]  ;;  %vm250_vm1 = vcmp.lt.s32.totalorder %v249_v57, 10 }
  0x3b   :  { %388 = vmatprep.subr.bf16.mxu0 %v545_v0  ;;  %v160_v20 = vld [vmem:[#allocation7 + $0x28] sm:$0xff]  ;;  %v395_v21 = vpack.c.bf16 %v68_v17, %v67_v16  ;;  %v69_v22 = vld [vmem:[#allocation5 + $0x40] sm:$0xff]  ;;  %v161_v25 = vld [vmem:[#allocation7 + $0x30] sm:$0xff] }
  0x3c   :  { %411 = vmatpush3.bf16.msra.mxu1 %v410_v15  ;;  %v70_v23 = vld [vmem:[#allocation5 + $0x48] sm:$0xff]  ;;  %v416_v24 = vpack.c.bf16 %v160_v20, %v159_v19  ;;  %v162_v26 = vld [vmem:[#allocation7 + $0x38] sm:$0xff]  ;;  %v71_v28 = vld [vmem:[#allocation5 + $0x50] sm:$0xff] }
  0x3d   :  { %412 = vmatprep.subr.bf16.mxu1 %v545_v0  ;;  %v398_v27 = vpack.c.bf16 %v70_v23, %v69_v22  ;;  %v72_v29 = vld [vmem:[#allocation5 + $0x58] sm:$0xff]  ;;  %v419_v30 = vpack.c.bf16 %v162_v26, %v161_v25  ;;  %v163_v31 = vld [vmem:[#allocation7 + $0x40] sm:$0xff]  ;;  %v164_v32 = vld [vmem:[#allocation7 + $0x48] sm:$0xff] }
  0x3e   :  { %390 = vmatpush3.bf16.msra.mxu0 %v389_v7  ;;  %v401_v33 = vpack.c.bf16 %v72_v29, %v71_v28  ;;  %v73_v34 = vld [vmem:[#allocation5 + $0x60] sm:$0xff]  ;;  %v74_v35 = vld [vmem:[#allocation5 + $0x68] sm:$0xff]  ;;  %v422_v36 = vpack.c.bf16 %v164_v32, %v163_v31  ;;  %v165_v37 = vld [vmem:[#allocation7 + $0x50] sm:$0xff] }
  0x3f   :  { %391 = vmatprep.subr.bf16.mxu0 %v545_v0  ;;  %v166_v38 = vld [vmem:[#allocation7 + $0x58] sm:$0xff]  ;;  %v404_v39 = vpack.c.bf16 %v74_v35, %v73_v34  ;;  %v75_v40 = vld [vmem:[#allocation5 + $0x70] sm:$0xff]  ;;  %v167_v43 = vld [vmem:[#allocation7 + $0x60] sm:$0xff] }
  0x40   :  { %414 = vmatpush3.bf16.msra.mxu1 %v413_v18  ;;  %v76_v41 = vld [vmem:[#allocation5 + $0x78] sm:$0xff]  ;;  %v425_v42 = vpack.c.bf16 %v166_v38, %v165_v37  ;;  %v168_v44 = vld [vmem:[#allocation7 + $0x68] sm:$0xff]  ;;  %v169_v48 = vld [vmem:[#allocation7 + $0x70] sm:$0xff] }
  0x41   :  { %415 = vmatprep.subr.bf16.mxu1 %v545_v0  ;;  %v407_v45 = vpack.c.bf16 %v76_v41, %v75_v40  ;;  %v428_v46 = vpack.c.bf16 %v168_v44, %v167_v43  ;;  %v60_v47 = vld [vmem:[#allocation2] sm:$0xff] }
  0x42   :  { %393 = vmatpush3.bf16.msra.mxu0 %v392_v14  ;;  %v170_v49 = vld [vmem:[#allocation7 + $0x78] sm:$0xff] }
  0x43   :  { %394 = vmatprep.subr.bf16.mxu0 %v545_v0  ;;  %v431_v50 = vpack.c.bf16 %v170_v49, %v169_v48  ;;  %v279_v51 = vld [vmem:[%s657_s2] ss:$0 sm:$0xff]  ;;  %s548_s2 = smov [#allocation8]  }
  0x44   :  { %417 = vmatpush3.bf16.msra.mxu1 %v416_v24  ;;  %v280_v58 = vld [vmem:[%s659_s4] ss:$0 sm:$0xff]  ;;  %s269_s7 = sshll.u32 %s548_s2, 4  ;;  %s270_s7 = int_to_ptr.vmem [resolvable:$true] %s269_s7 }
  0x45   :  { %418 = vmatprep.subr.bf16.mxu1 %v545_v0  ;;  %s512_s4 = scalar_lea.vmem %s270_s7, 128  ;;  %p517_p11 = scmp.lt.s32.totalorder %s270_s7, %s270_s7 }
  0x46   :  { %396 = vmatpush3.bf16.msra.mxu0 %v395_v21  ;;  %p513_p10 = scmp.ne.s32.totalorder %s270_s7, %s512_s4  ;;  %p518_p12 = scmp.lt.s32.totalorder %s512_s4, %s512_s4 }
  0x47   :  { %397 = vmatprep.subr.bf16.mxu0 %v545_v0 }
  0x48   :  { %420 = vmatpush3.bf16.msra.mxu1 %v419_v30  ;;  %p519_p13 = por %p518_p12, %p517_p11 }
  0x49   :  { %421 = vmatprep.subr.bf16.mxu1 %v545_v0 }
  0x4a   :  { %399 = vmatpush3.bf16.msra.mxu0 %v398_v27  ;;  %p520_p0 = pnand %p519_p13, %p513_p10 }
  0x4b   :  { %400 = vmatprep.subr.bf16.mxu0 %v545_v0 }
  0x4c   :  { %423 = vmatpush3.bf16.msra.mxu1 %v422_v36 }
  0x4d   :  { %424 = vmatprep.subr.bf16.mxu1 %v545_v0 }
  0x4e   :  { %402 = vmatpush3.bf16.msra.mxu0 %v401_v33 }
  0x4f   :  { %403 = vmatprep.subr.bf16.mxu0 %v545_v0 }
  0x50   :  { %426 = vmatpush3.bf16.msra.mxu1 %v425_v42 }
  0x51   :  { %427 = vmatprep.subr.bf16.mxu1 %v545_v0 }
  0x52   :  { %405 = vmatpush3.bf16.msra.mxu0 %v404_v39 }
  0x53   :  { %406 = vmatprep.subr.bf16.mxu0 %v545_v0 }
  0x54   :  { %429 = vmatpush3.bf16.msra.mxu1 %v428_v46 }
  0x55   :  { %430 = vmatprep.subr.bf16.mxu1 %v545_v0 }
  0x56   :  { %408 = vmatpush3.bf16.msra.mxu0 %v407_v45 }
  0x58   :  { %432 = vmatpush3.bf16.msra.mxu1 %v431_v50 }
  0x59   :  { %348 = vmatmul.mubr.f32.vlgmr.msra.gmra.mrb[0].mxu0 %v60_v47 }
 0x12c   :  { %v150_v52 = vpop.f32.mrb[0].mxu0 }
 0x12d   :  { %v151_v53 = vadd.f32 %v279_v51, %v150_v52  ;;  %v349_v54 = vpop.f32.mrb[1].mxu0 }
 0x12f   :  { %v154_v55 = vmax.f32 %v151_v53, 0.0 }
 0x131   :  { %383 = vmatmul.mubr.f32.vlgmr.msra.gmra.mrb[0].mxu1 %v154_v55 }
 0x204   :  { %v244_v59 = vpop.f32.mrb[0].mxu1 }
 0x205   :  { %v245_v60 = vadd.f32 %v280_v58, %v244_v59  ;;  %v384_v61 = vpop.f32.mrb[1].mxu1 }
 0x207   :  { %v251_v62 = vsel %vm250_vm1, %v245_v60, -inf }
 0x208   :  { %252 = vmax.xlane.f32.xlu0 %v251_v62 }
 0x295   :  { %v253_v63 = vpop.xlane.xlu0 %252 }
 0x296   :  { %v254_v0 = vsub.f32 %v251_v62, %v253_v63 }
 0x298   :  { %v255_v1 = vmul.f32 1.442695, %v254_v0 }
 0x29a   :  { %442 = vpow2.f32 %v255_v1 }
 0x2a4   :  { %v443_v2 = vpop.eup %442 }
 0x2a5   :  { %257 = vadd.xlane.f32.xlu0 %v443_v2 }
 0x332   :  { %v258_v3 = vpop.xlane.xlu0 %257 }
 0x333   :  { %444 = vlog2.f32 %v258_v3 }
 0x33d   :  { %v445_v4 = vpop.eup %444 }
 0x33e   :  { %v260_v5 = vmul.f32 0.6931472, %v445_v4 }
 0x340   :  { %v261_v6 = vsub.f32 %v254_v0, %v260_v5 }
 0x342   :  { %262 = vst [vmem:[#allocation8] sm:$0xff] %v261_v6 }
 0x343   :  { %523 = shalt.err (!%p520_p0)
}
 0x344   :  { %s524_s10 = scalar_lea.hbm %s660_s5, 128 }
 0x345   :  { %p525_p1 = scmp.ne.s32.totalorder %s660_s5, %s524_s10  ;;  %p528_p2 = scmp.lt.u32.totalorder %s524_s10, %s660_s5 }
 0x347   :  { %p530_p3 = pnand %p528_p2, %p525_p1 }
 0x349   :  { %533 = shalt.err (!%p530_p3)
}
 0x34a   :  { %272 = dma.vmem_to_hbm [thread:$0]  %s270_s7, 128, %s660_s5, [#allocation4]  }
 0x34b   :  { %538 = dma.done.wait [#allocation4], 128  }
 0x34c   :  { %539 = vsyncadd [#allocation4], 4294967168 }
 0x34d   :  { %276 = vsyncpa [#allocation3], 1 }
 0x34e   :  { %277 = vsyncpa [#allocation6], 1 }
 0x34f   :  { %278 = vsyncpa [#allocation4], 1 }

</bundles_post_ra>
